<compile_context>
chip_gen: v7x
topology: tpu7x:2x2x1
jax: 0.10.0
libtpu: 0.0.40
codegen_flags: <defaults>
</compile_context>

<pallas_src>
import jax
import jax.numpy as jnp
from jax.experimental import pallas as pl
from jax.experimental.pallas import tpu as pltpu

BN_EPS = 1e-5


# ---------------------------------------------------------------------------
# Pallas kernels
# ---------------------------------------------------------------------------
def _linear_bn_relu_kernel(x_ref, wt_ref, g_ref, beta_ref, o_ref):
    """One (H-tile, Din-tile) grid step of relu(batchnorm(x @ Wt)).

    Grid = (H_tiles, Din_tiles); Din (axis 1) is the reduction axis.  The f32
    output block itself is the accumulator (same block index for every k).
    The hidden-layer bias is omitted: BN subtracts the per-feature batch mean,
    which cancels any per-feature constant exactly.
    """
    k = pl.program_id(1)

    @pl.when(k == 0)
    def _():
        o_ref[...] = jnp.zeros_like(o_ref)

    o_ref[...] += jnp.dot(
        x_ref[...], wt_ref[...], preferred_element_type=jnp.float32
    )

    @pl.when(k == pl.num_programs(1) - 1)
    def _():
        y = o_ref[...]                                    # [N, th] f32
        # BatchNorm1d, training mode: batch mean, biased variance (two-pass).
        mean = jnp.mean(y, axis=0, keepdims=True)         # [1, th]
        centered = y - mean
        var = jnp.mean(centered * centered, axis=0, keepdims=True)
        # Fold gamma * rsqrt(var+eps) into one scale; shift = beta - mean*scale.
        scale = g_ref[...] * jax.lax.rsqrt(var + BN_EPS)
        shift = beta_ref[...] - mean * scale
        o_ref[...] = jnp.maximum(y * scale + shift, 0.0)


def _linear_bias_kernel(x_ref, wt_ref, b_ref, o_ref):
    """One grid step of the plain final layer: x @ Wt + b (accumulate in o_ref)."""
    k = pl.program_id(1)

    @pl.when(k == 0)
    def _():
        o_ref[...] = jnp.zeros_like(o_ref)

    o_ref[...] += jnp.dot(
        x_ref[...], wt_ref[...], preferred_element_type=jnp.float32
    )

    @pl.when(k == pl.num_programs(1) - 1)
    def _():
        o_ref[...] = o_ref[...] + b_ref[...]


# ---------------------------------------------------------------------------
# Tiling helpers
# ---------------------------------------------------------------------------
def _round_up(v, m):
    return ((v + m - 1) // m) * m


def _pick_tile(padded_dim, pref=512):
    """Largest multiple-of-128 divisor of padded_dim that is <= pref."""
    t = min(pref, padded_dim)
    while padded_dim % t:
        t -= 128
    return t


# ---------------------------------------------------------------------------
# Wrappers around pallas_call (operate on lane-padded activations)
# ---------------------------------------------------------------------------
def linear_bn_relu(xp, w, gamma, beta, *, use_bf16_matmul=False):
    """relu(batchnorm1d(x @ w.T + b)) with the bias folded away by BN.

    xp : [N, Dp] zero-padded input (Dp multiple of 128, Dp >= w.shape[1]).
    Returns the [N, Hp] zero-padded activation (pad columns are exact zeros).
    """
    n, dp = xp.shape
    h, din = w.shape
    assert dp % 128 == 0 and dp >= din
    hp = _round_up(h, 128)
    tk = _pick_tile(dp)
    th = _pick_tile(hp)

    wt = jnp.pad(w.T, ((0, dp - din), (0, hp - h)))        # [Dp, Hp] lane-dense
    gp = jnp.pad(gamma, (0, hp - h)).reshape(1, hp)
    bp = jnp.pad(beta, (0, hp - h)).reshape(1, hp)

    if use_bf16_matmul:
        xp = xp.astype(jnp.bfloat16)
        wt = wt.astype(jnp.bfloat16)

    grid = (hp // th, dp // tk)                            # reduction axis last
    return pl.pallas_call(
        _linear_bn_relu_kernel,
        out_shape=jax.ShapeDtypeStruct((n, hp), jnp.float32),
        grid_spec=pltpu.PrefetchScalarGridSpec(
            num_scalar_prefetch=0,
            grid=grid,
            in_specs=[
                pl.BlockSpec((n, tk), lambda j, k: (0, k)),    # x  [N, tk]
                pl.BlockSpec((tk, th), lambda j, k: (k, j)),   # Wt [tk, th]
                pl.BlockSpec((1, th), lambda j, k: (0, j)),    # gamma
                pl.BlockSpec((1, th), lambda j, k: (0, j)),    # beta
            ],
            out_specs=pl.BlockSpec((n, th), lambda j, k: (0, j)),
        ),
        compiler_params=pltpu.CompilerParams(
            dimension_semantics=("parallel", "arbitrary")),
    )(xp, wt, gp, bp)


def linear(xp, w, b, *, use_bf16_matmul=False):
    """x @ w.T + b on a lane-padded input xp [N, Dp]; returns padded [N, Op]."""
    n, dp = xp.shape
    o, din = w.shape
    assert dp % 128 == 0 and dp >= din
    op = _round_up(o, 128)
    tk = _pick_tile(dp)
    th = _pick_tile(op)

    wt = jnp.pad(w.T, ((0, dp - din), (0, op - o)))
    bp = jnp.pad(b, (0, op - o)).reshape(1, op)

    if use_bf16_matmul:
        xp = xp.astype(jnp.bfloat16)
        wt = wt.astype(jnp.bfloat16)

    grid = (op // th, dp // tk)
    return pl.pallas_call(
        _linear_bias_kernel,
        out_shape=jax.ShapeDtypeStruct((n, op), jnp.float32),
        grid_spec=pltpu.PrefetchScalarGridSpec(
            num_scalar_prefetch=0,
            grid=grid,
            in_specs=[
                pl.BlockSpec((n, tk), lambda j, k: (0, k)),
                pl.BlockSpec((tk, th), lambda j, k: (k, j)),
                pl.BlockSpec((1, th), lambda j, k: (0, j)),
            ],
            out_specs=pl.BlockSpec((n, th), lambda j, k: (0, j)),
        ),
        compiler_params=pltpu.CompilerParams(
            dimension_semantics=("parallel", "arbitrary")),
    )(xp, wt, bp)


# ---------------------------------------------------------------------------
# MLP module (parameters + forward)
# ---------------------------------------------------------------------------
def init_mlp_params(key, num_layers, input_dim, hidden_dim, output_dim):
    """Mirror PyTorch shapes: W [out, in], b [out]; BN gamma=1, beta=0."""
    if num_layers < 1:
        raise ValueError("number of layers should be positive")

    params = {"linears": [], "bn": []}

    def _init_linear(k, fan_in, fan_out):
        kw, kb = jax.random.split(k)
        bound = 1.0 / jnp.sqrt(fan_in)
        w = jax.random.uniform(kw, (fan_out, fan_in), jnp.float32, -bound, bound)
        b = jax.random.uniform(kb, (fan_out,), jnp.float32, -bound, bound)
        return w, b

    if num_layers == 1:
        (k,) = jax.random.split(key, 1)
        params["linears"].append(_init_linear(k, input_dim, output_dim))
        return params

    keys = jax.random.split(key, num_layers)
    for layer in range(num_layers - 1):
        fan_in = input_dim if layer == 0 else hidden_dim
        params["linears"].append(_init_linear(keys[layer], fan_in, hidden_dim))
        params["bn"].append((jnp.ones((hidden_dim,), jnp.float32),
                             jnp.zeros((hidden_dim,), jnp.float32)))
    params["linears"].append(_init_linear(keys[-1], hidden_dim, output_dim))
    return params


def mlp_forward(params, x, num_layers, *, use_bf16_matmul=False):
    n, din = x.shape
    dp = _round_up(din, 128)
    xp = jnp.pad(x, ((0, 0), (0, dp - din)))               # pad once

    if num_layers == 1:
        w, b = params["linears"][0]
        return linear(xp, w, b, use_bf16_matmul=use_bf16_matmul)[:, : w.shape[0]]

    h = xp
    for layer in range(num_layers - 1):
        w, _b = params["linears"][layer]      # bias cancelled by BN mean-sub
        gamma, beta = params["bn"][layer]
        h = linear_bn_relu(h, w, gamma, beta, use_bf16_matmul=use_bf16_matmul)
    w, b = params["linears"][-1]
    out = linear(h, w, b, use_bf16_matmul=use_bf16_matmul)
    return out[:, : w.shape[0]]                             # slice once


# ---------------------------------------------------------------------------
# Pure-JAX reference (exact PyTorch semantics, incl. hidden-layer bias)
# ---------------------------------------------------------------------------
def mlp_reference(params, x, num_layers):
    if num_layers == 1:
        w, b = params["linears"][0]
        return x @ w.T + b
    h = x
    for layer in range(num_layers - 1):
        w, b = params["linears"][layer]
        gamma, beta = params["bn"][layer]
        y = h @ w.T + b
        mean = jnp.mean(y, axis=0, keepdims=True)
        var = jnp.mean((y - mean) ** 2, axis=0, keepdims=True)
        y_hat = (y - mean) / jnp.sqrt(var + BN_EPS)
        h = jnp.maximum(gamma * y_hat + beta, 0.0)
    w, b = params["linears"][-1]
    return h @ w.T + b


if __name__ == "__main__":
    num_layers, input_dim, hidden_dim, output_dim = 3, 16, 32, 8
    batch = 8

    key = jax.random.PRNGKey(0)
    kx, kp = jax.random.split(key)
    x = jax.random.normal(kx, (batch, input_dim), jnp.float32)
    params = init_mlp_params(kp, num_layers, input_dim, hidden_dim, output_dim)

    fwd = jax.jit(mlp_forward, static_argnums=2)
    out = jax.block_until_ready(fwd(params, x, num_layers))
    ref = mlp_reference(params, x, num_layers)
    assert out.shape == (batch, output_dim)
    assert jnp.allclose(out, ref, atol=1e-4, rtol=1e-4), "mismatch vs reference"

    # Also exercise the num_layers == 1 (plain linear) path.
    params1 = init_mlp_params(kp, 1, input_dim, hidden_dim, output_dim)
    out1 = jax.block_until_ready(fwd(params1, x, 1))
    ref1 = mlp_reference(params1, x, 1)
    assert out1.shape == (batch, output_dim)
    assert jnp.allclose(out1, ref1, atol=1e-4, rtol=1e-4), "mismatch (1-layer)"

    print("KERNEL_OK")
</pallas_src>

<mosaic_0001>
module attributes {stable_mosaic.version = 11 : i64} {
  func.func @_linear_bn_relu_kernel(%arg0: i32, %arg1: i32, %arg2: memref<8x128xf32, #tpu.memory_space<vmem>>, %arg3: memref<128x128xf32, #tpu.memory_space<vmem>>, %arg4: memref<1x128xf32, #tpu.memory_space<vmem>>, %arg5: memref<1x128xf32, #tpu.memory_space<vmem>>, %arg6: memref<8x128xf32, #tpu.memory_space<vmem>>) attributes {dimension_semantics = [#tpu.dimension_semantics<parallel>, #tpu.dimension_semantics<arbitrary>], iteration_bounds = array<i64: 1, 1>, scalar_prefetch = 0 : i64, scratch_operands = 0 : i64, tpu.core_type = #tpu.core_type<tc>, window_params = [{transform_indices = @transform_0, window_bounds = array<i64: 8, 128>}, {transform_indices = @transform_1, window_bounds = array<i64: 128, 128>}, {transform_indices = @transform_2, window_bounds = array<i64: 1, 128>}, {transform_indices = @transform_3, window_bounds = array<i64: 1, 128>}, {transform_indices = @transform_4, window_bounds = array<i64: 8, 128>}]} {
    %c0_i32 = arith.constant 0 : i32
    %0 = arith.cmpi eq, %arg1, %c0_i32 : i32
    %1 = arith.extui %0 : i1 to i32
    %c0_i32_0 = arith.constant 0 : i32
    %2 = arith.cmpi ne, %1, %c0_i32_0 : i32
    scf.if %2 {
      %cst_10 = arith.constant 0.000000e+00 : f32
      %12 = vector.broadcast %cst_10 : f32 to vector<8x128xf32>
      %c0_11 = arith.constant 0 : index
      %c0_12 = arith.constant 0 : index
      %13 = vector.load %arg6[%c0_11, %c0_12] : memref<8x128xf32, #tpu.memory_space<vmem>>, vector<8x128xf32>
      tpu.vector_store %arg6[%c0_11, %c0_12], %12 {strides = array<i32>} : memref<8x128xf32, #tpu.memory_space<vmem>>, vector<8x128xf32>,
    } else {
    }
    %c0 = arith.constant 0 : index
    %c0_1 = arith.constant 0 : index
    %3 = vector.load %arg6[%c0, %c0_1] : memref<8x128xf32, #tpu.memory_space<vmem>>, vector<8x128xf32>
    %c0_2 = arith.constant 0 : index
    %c0_3 = arith.constant 0 : index
    %4 = vector.load %arg2[%c0_2, %c0_3] : memref<8x128xf32, #tpu.memory_space<vmem>>, vector<8x128xf32>
    %c0_4 = arith.constant 0 : index
    %c0_5 = arith.constant 0 : index
    %5 = vector.load %arg3[%c0_4, %c0_5] : memref<128x128xf32, #tpu.memory_space<vmem>>, vector<128x128xf32>
    %cst = arith.constant dense<0.000000e+00> : vector<8x128xf32>
    %6 = tpu.matmul %4, %5, %cst {dimension_numbers = #tpu.dot_dimension_numbers<[1], [0], [0], [1], [0, 0, 1, 1], [], []>} : vector<8x128xf32>, vector<128x128xf32>, vector<8x128xf32> -> vector<8x128xf32>
    %7 = arith.addf %3, %6 : vector<8x128xf32>
    %c0_6 = arith.constant 0 : index
    %c0_7 = arith.constant 0 : index
    %8 = vector.load %arg6[%c0_6, %c0_7] : memref<8x128xf32, #tpu.memory_space<vmem>>, vector<8x128xf32>
    tpu.vector_store %arg6[%c0_6, %c0_7], %7 {strides = array<i32>} : memref<8x128xf32, #tpu.memory_space<vmem>>, vector<8x128xf32>,
    %c0_i32_8 = arith.constant 0 : i32
    %9 = arith.cmpi eq, %arg1, %c0_i32_8 : i32
    %10 = arith.extui %9 : i1 to i32
    %c0_i32_9 = arith.constant 0 : i32
    %11 = arith.cmpi ne, %10, %c0_i32_9 : i32
    scf.if %11 {
      %c0_10 = arith.constant 0 : index
      %c0_11 = arith.constant 0 : index
      %12 = vector.load %arg6[%c0_10, %c0_11] : memref<8x128xf32, #tpu.memory_space<vmem>>, vector<8x128xf32>
      %cst_12 = arith.constant dense<0.000000e+00> : vector<128xf32>
      %13 = vector.multi_reduction <add>, %12, %cst_12 [0] : vector<8x128xf32> to vector<128xf32>
      %14 = vector.shape_cast %13 : vector<128xf32> to vector<1x128xf32>
      %cst_13 = arith.constant 8.000000e+00 : f32
      %15 = vector.broadcast %cst_13 : f32 to vector<1x128xf32>
      %16 = arith.divf %14, %15 : vector<1x128xf32>
      %17 = vector.broadcast %16 : vector<1x128xf32> to vector<8x128xf32>
      %18 = arith.subf %12, %17 : vector<8x128xf32>
      %19 = arith.mulf %18, %18 : vector<8x128xf32>
      %cst_14 = arith.constant dense<0.000000e+00> : vector<128xf32>
      %20 = vector.multi_reduction <add>, %19, %cst_14 [0] : vector<8x128xf32> to vector<128xf32>
      %21 = vector.shape_cast %20 : vector<128xf32> to vector<1x128xf32>
      %cst_15 = arith.constant 8.000000e+00 : f32
      %22 = vector.broadcast %cst_15 : f32 to vector<1x128xf32>
      %23 = arith.divf %21, %22 : vector<1x128xf32>
      %c0_16 = arith.constant 0 : index
      %c0_17 = arith.constant 0 : index
      %24 = vector.load %arg4[%c0_16, %c0_17] : memref<1x128xf32, #tpu.memory_space<vmem>>, vector<1x128xf32>
      %cst_18 = arith.constant 9.99999974E-6 : f32
      %25 = vector.broadcast %cst_18 : f32 to vector<1x128xf32>
      %26 = arith.addf %23, %25 : vector<1x128xf32>
      %27 = math.rsqrt %26 : vector<1x128xf32>
      %28 = arith.mulf %24, %27 : vector<1x128xf32>
      %c0_19 = arith.constant 0 : index
      %c0_20 = arith.constant 0 : index
      %29 = vector.load %arg5[%c0_19, %c0_20] : memref<1x128xf32, #tpu.memory_space<vmem>>, vector<1x128xf32>
      %30 = arith.mulf %16, %28 : vector<1x128xf32>
      %31 = arith.subf %29, %30 : vector<1x128xf32>
      %32 = vector.broadcast %28 : vector<1x128xf32> to vector<8x128xf32>
      %33 = arith.mulf %12, %32 : vector<8x128xf32>
      %34 = vector.broadcast %31 : vector<1x128xf32> to vector<8x128xf32>
      %35 = arith.addf %33, %34 : vector<8x128xf32>
      %cst_21 = arith.constant 0.000000e+00 : f32
      %36 = vector.broadcast %cst_21 : f32 to vector<8x128xf32>
      %37 = arith.maximumf %35, %36 : vector<8x128xf32>
      %c0_22 = arith.constant 0 : index
      %c0_23 = arith.constant 0 : index
      %38 = vector.load %arg6[%c0_22, %c0_23] : memref<8x128xf32, #tpu.memory_space<vmem>>, vector<8x128xf32>
      tpu.vector_store %arg6[%c0_22, %c0_23], %37 {strides = array<i32>} : memref<8x128xf32, #tpu.memory_space<vmem>>, vector<8x128xf32>,
    } else {
    }
    return
  }
  func.func @transform_0(%arg0: i32, %arg1: i32) -> (i32, i32) {
    %c0_i32 = arith.constant 0 : i32
    %c0_i32_0 = arith.constant 0 : i32
    return %c0_i32, %arg1 : i32, i32
  }
  func.func @transform_1(%arg0: i32, %arg1: i32) -> (i32, i32) {
    %c0_i32 = arith.constant 0 : i32
    return %arg1, %arg0 : i32, i32
  }
  func.func @transform_2(%arg0: i32, %arg1: i32) -> (i32, i32) {
    %c0_i32 = arith.constant 0 : i32
    %c0_i32_0 = arith.constant 0 : i32
    return %c0_i32, %arg0 : i32, i32
  }
  func.func @transform_3(%arg0: i32, %arg1: i32) -> (i32, i32) {
    %c0_i32 = arith.constant 0 : i32
    %c0_i32_0 = arith.constant 0 : i32
    return %c0_i32, %arg0 : i32, i32
  }
  func.func @transform_4(%arg0: i32, %arg1: i32) -> (i32, i32) {
    %c0_i32 = arith.constant 0 : i32
    %c0_i32_0 = arith.constant 0 : i32
    return %c0_i32, %arg0 : i32, i32
  }
}

module attributes {stable_mosaic.version = 11 : i64} {
  func.func @_linear_bias_kernel(%arg0: i32, %arg1: i32, %arg2: memref<8x128xf32, #tpu.memory_space<vmem>>, %arg3: memref<128x128xf32, #tpu.memory_space<vmem>>, %arg4: memref<1x128xf32, #tpu.memory_space<vmem>>, %arg5: memref<8x128xf32, #tpu.memory_space<vmem>>) attributes {dimension_semantics = [#tpu.dimension_semantics<parallel>, #tpu.dimension_semantics<arbitrary>], iteration_bounds = array<i64: 1, 1>, scalar_prefetch = 0 : i64, scratch_operands = 0 : i64, tpu.core_type = #tpu.core_type<tc>, window_params = [{transform_indices = @transform_0, window_bounds = array<i64: 8, 128>}, {transform_indices = @transform_1, window_bounds = array<i64: 128, 128>}, {transform_indices = @transform_2, window_bounds = array<i64: 1, 128>}, {transform_indices = @transform_3, window_bounds = array<i64: 8, 128>}]} {
    %c0_i32 = arith.constant 0 : i32
    %0 = arith.cmpi eq, %arg1, %c0_i32 : i32
    %1 = arith.extui %0 : i1 to i32
    %c0_i32_0 = arith.constant 0 : i32
    %2 = arith.cmpi ne, %1, %c0_i32_0 : i32
    scf.if %2 {
      %cst_10 = arith.constant 0.000000e+00 : f32
      %12 = vector.broadcast %cst_10 : f32 to vector<8x128xf32>
      %c0_11 = arith.constant 0 : index
      %c0_12 = arith.constant 0 : index
      %13 = vector.load %arg5[%c0_11, %c0_12] : memref<8x128xf32, #tpu.memory_space<vmem>>, vector<8x128xf32>
      tpu.vector_store %arg5[%c0_11, %c0_12], %12 {strides = array<i32>} : memref<8x128xf32, #tpu.memory_space<vmem>>, vector<8x128xf32>,
    } else {
    }
    %c0 = arith.constant 0 : index
    %c0_1 = arith.constant 0 : index
    %3 = vector.load %arg5[%c0, %c0_1] : memref<8x128xf32, #tpu.memory_space<vmem>>, vector<8x128xf32>
    %c0_2 = arith.constant 0 : index
    %c0_3 = arith.constant 0 : index
    %4 = vector.load %arg2[%c0_2, %c0_3] : memref<8x128xf32, #tpu.memory_space<vmem>>, vector<8x128xf32>
    %c0_4 = arith.constant 0 : index
    %c0_5 = arith.constant 0 : index
    %5 = vector.load %arg3[%c0_4, %c0_5] : memref<128x128xf32, #tpu.memory_space<vmem>>, vector<128x128xf32>
    %cst = arith.constant dense<0.000000e+00> : vector<8x128xf32>
    %6 = tpu.matmul %4, %5, %cst {dimension_numbers = #tpu.dot_dimension_numbers<[1], [0], [0], [1], [0, 0, 1, 1], [], []>} : vector<8x128xf32>, vector<128x128xf32>, vector<8x128xf32> -> vector<8x128xf32>
    %7 = arith.addf %3, %6 : vector<8x128xf32>
    %c0_6 = arith.constant 0 : index
    %c0_7 = arith.constant 0 : index
    %8 = vector.load %arg5[%c0_6, %c0_7] : memref<8x128xf32, #tpu.memory_space<vmem>>, vector<8x128xf32>
    tpu.vector_store %arg5[%c0_6, %c0_7], %7 {strides = array<i32>} : memref<8x128xf32, #tpu.memory_space<vmem>>, vector<8x128xf32>,
    %c0_i32_8 = arith.constant 0 : i32
    %9 = arith.cmpi eq, %arg1, %c0_i32_8 : i32
    %10 = arith.extui %9 : i1 to i32
    %c0_i32_9 = arith.constant 0 : i32
    %11 = arith.cmpi ne, %10, %c0_i32_9 : i32
    scf.if %11 {
      %c0_10 = arith.constant 0 : index
      %c0_11 = arith.constant 0 : index
      %12 = vector.load %arg5[%c0_10, %c0_11] : memref<8x128xf32, #tpu.memory_space<vmem>>, vector<8x128xf32>
      %c0_12 = arith.constant 0 : index
      %c0_13 = arith.constant 0 : index
      %13 = vector.load %arg4[%c0_12, %c0_13] : memref<1x128xf32, #tpu.memory_space<vmem>>, vector<1x128xf32>
      %14 = vector.broadcast %13 : vector<1x128xf32> to vector<8x128xf32>
      %15 = arith.addf %12, %14 : vector<8x128xf32>
      %c0_14 = arith.constant 0 : index
      %c0_15 = arith.constant 0 : index
      %16 = vector.load %arg5[%c0_14, %c0_15] : memref<8x128xf32, #tpu.memory_space<vmem>>, vector<8x128xf32>
      tpu.vector_store %arg5[%c0_14, %c0_15], %15 {strides = array<i32>} : memref<8x128xf32, #tpu.memory_space<vmem>>, vector<8x128xf32>,
    } else {
    }
    return
  }
  func.func @transform_0(%arg0: i32, %arg1: i32) -> (i32, i32) {
    %c0_i32 = arith.constant 0 : i32
    %c0_i32_0 = arith.constant 0 : i32
    return %c0_i32, %arg1 : i32, i32
  }
  func.func @transform_1(%arg0: i32, %arg1: i32) -> (i32, i32) {
    %c0_i32 = arith.constant 0 : i32
    return %arg1, %arg0 : i32, i32
  }
  func.func @transform_2(%arg0: i32, %arg1: i32) -> (i32, i32) {
    %c0_i32 = arith.constant 0 : i32
    %c0_i32_0 = arith.constant 0 : i32
    return %c0_i32, %arg0 : i32, i32
  }
  func.func @transform_3(%arg0: i32, %arg1: i32) -> (i32, i32) {
    %c0_i32 = arith.constant 0 : i32
    %c0_i32_0 = arith.constant 0 : i32
    return %c0_i32, %arg0 : i32, i32
  }
}

</mosaic_0001>

<bundles_post_ra>
// kernel: mlp_forward.3
= control target key start
LH: loop header
LB: loop body
LE: loop exit
PB: predicated region body
PF: predicated region fallthrough
CT: control target
= control target key end

     0   :  { %v241_v0 = vmov 0.0|0.0   ;;  %vm242_vm0 = vmmov 0   ;;  %v243_v4 = vmov 0.0   ;;  %v141_v46 = vlaneseq  ;;  %s329_s1 = inlined_call_operand.vmem [shape: f32[128,128], index: 1, kind: input, shape index: {}]   ;;  %s330_s0 = inlined_call_operand.vmem [shape: f32[8,128], index: 0, kind: input, shape index: {}]   ;;  %s331_s2 = inlined_call_operand.vmem [shape: f32[1,128], index: 2, kind: input, shape index: {}]   ;;  %s332_s3 = inlined_call_operand.vmem [shape: f32[1,128], index: 3, kind: input, shape index: {}]   ;;  %s333_s4 = inlined_call_operand.vmem [shape: f32[8,128], index: 4, kind: output, shape index: {}]  }
   0x1   :  { %212 = vmatprep.subr.bf16.mxu0 %v241_v0  ;;  %v24_v1 = vld [vmem:[%s329_s1] sm:$0xff]  ;;  %v25_v2 = vld [vmem:[%s329_s1 + $0x8] sm:$0xff]  ;;  %v26_v3 = vld [vmem:[%s329_s1 + $0x10] sm:$0xff]  ;;  %209 = vmatprep.mubr.msk.f32.mxu0 %vm242_vm0, %v243_v4 }
   0x2   :  { %v213_v5 = vpack.c.bf16 %v25_v2, %v24_v1  ;;  %v27_v6 = vld [vmem:[%s329_s1 + $0x18] sm:$0xff]  ;;  %v28_v8 = vld [vmem:[%s329_s1 + $0x20] sm:$0xff]  ;;  %v29_v9 = vld [vmem:[%s329_s1 + $0x28] sm:$0xff]  ;;  %v142_v47 = vshrl.u32 %v141_v46, 7 }
   0x3   :  { %v216_v7 = vpack.c.bf16 %v27_v6, %v26_v3  ;;  %v219_v10 = vpack.c.bf16 %v29_v9, %v28_v8  ;;  %v30_v11 = vld [vmem:[%s329_s1 + $0x30] sm:$0xff]  ;;  %v31_v12 = vld [vmem:[%s329_s1 + $0x38] sm:$0xff]  ;;  %v32_v14 = vld [vmem:[%s329_s1 + $0x40] sm:$0xff] }
   0x4   :  { %214 = vmatpush3.bf16.msra.mxu0 %v213_v5  ;;  %v222_v13 = vpack.c.bf16 %v31_v12, %v30_v11  ;;  %v33_v15 = vld [vmem:[%s329_s1 + $0x48] sm:$0xff]  ;;  %v34_v17 = vld [vmem:[%s329_s1 + $0x50] sm:$0xff]  ;;  %v35_v18 = vld [vmem:[%s329_s1 + $0x58] sm:$0xff]  ;;  %v143_v49 = vsub.s32 0, %v142_v47 }
   0x5   :  { %215 = vmatprep.subr.bf16.mxu0 %v241_v0  ;;  %v225_v16 = vpack.c.bf16 %v33_v15, %v32_v14  ;;  %v228_v19 = vpack.c.bf16 %v35_v18, %v34_v17  ;;  %v36_v20 = vld [vmem:[%s329_s1 + $0x60] sm:$0xff]  ;;  %v37_v21 = vld [vmem:[%s329_s1 + $0x68] sm:$0xff]  ;;  %v38_v23 = vld [vmem:[%s329_s1 + $0x70] sm:$0xff] }
   0x6   :  { %v231_v22 = vpack.c.bf16 %v37_v21, %v36_v20  ;;  %v39_v24 = vld [vmem:[%s329_s1 + $0x78] sm:$0xff]  ;;  %v23_v26 = vld [vmem:[%s330_s0] sm:$0xff] }
   0x7   :  { %v234_v25 = vpack.c.bf16 %v39_v24, %v38_v23  ;;  %v133_v48 = vld [vmem:[%s331_s2] sm:$0x1] }
   0x8   :  { %217 = vmatpush3.bf16.msra.mxu0 %v216_v7  ;;  %v137_v52 = vld [vmem:[%s332_s3] sm:$0x1] }
   0x9   :  { %218 = vmatprep.subr.bf16.mxu0 %v241_v0 }
   0xc   :  { %220 = vmatpush3.bf16.msra.mxu0 %v219_v10 }
   0xd   :  { %221 = vmatprep.subr.bf16.mxu0 %v241_v0 }
  0x10   :  { %223 = vmatpush3.bf16.msra.mxu0 %v222_v13 }
  0x11   :  { %224 = vmatprep.subr.bf16.mxu0 %v241_v0 }
  0x14   :  { %226 = vmatpush3.bf16.msra.mxu0 %v225_v16 }
  0x15   :  { %227 = vmatprep.subr.bf16.mxu0 %v241_v0 }
  0x18   :  { %229 = vmatpush3.bf16.msra.mxu0 %v228_v19 }
  0x19   :  { %230 = vmatprep.subr.bf16.mxu0 %v241_v0 }
  0x1c   :  { %232 = vmatpush3.bf16.msra.mxu0 %v231_v22 }
  0x1d   :  { %233 = vmatprep.subr.bf16.mxu0 %v241_v0 }
  0x20   :  { %235 = vmatpush3.bf16.msra.mxu0 %v234_v25 }
  0x23   :  { %210 = vmatmul.mubr.f32.vlgmr.msra.gmra.mrb[0].mxu0 %v23_v26 }
  0xf6   :  { %v106_v27 = vpop.f32.mrb[0].mxu0 }
  0xf7   :  { %v211_v28 = vpop.f32.mrb[1].mxu0  ;;  %v116_v29 = vrot.slane %v106_v27, 4 }
  0xf9   :  { %v117_v30 = vadd.f32 %v116_v29, %v106_v27 }
  0xfb   :  { %v118_v31 = vrot.slane %v117_v30, 2 }
  0xfd   :  { %v119_v32 = vadd.f32 %v118_v31, %v117_v30 }
  0xff   :  { %v120_v33 = vrot.slane %v119_v32, 1 }
 0x101   :  { %v121_v34 = vadd.f32 %v120_v33, %v119_v32 }
 0x103   :  { %v123_v35 = vmul.f32 0.125, %v121_v34 }
 0x105   :  { %v124_v36 = vsub.f32 %v106_v27, %v123_v35 }
 0x107   :  { %v125_v37 = vmul.f32 %v124_v36, %v124_v36 }
 0x109   :  { %v126_v38 = vrot.slane %v125_v37, 4 }
 0x10b   :  { %v127_v39 = vadd.f32 %v126_v38, %v125_v37 }
 0x10d   :  { %v128_v40 = vrot.slane %v127_v39, 2 }
 0x10f   :  { %v129_v41 = vadd.f32 %v128_v40, %v127_v39 }
 0x111   :  { %v130_v42 = vrot.slane %v129_v41, 1 }
 0x113   :  { %v131_v43 = vadd.f32 %v130_v42, %v129_v41 }
 0x115   :  { %v132_v44 = vmul.f32 0.125, %v131_v43 }
 0x117   :  { %v134_v45 = vadd.f32 1e-05, %v132_v44 }
 0x119   :  { %239 = vrsqrt.f32 %v134_v45 }
 0x123   :  { %v240_v50 = vpop.eup %239 }
 0x124   :  { %v136_v51 = vmul.f32 %v240_v50, %v133_v48 }
 0x126   :  { %v138_v53 = vmul.f32 %v136_v51, %v123_v35  ;;  %v144_v54 = vrot.slane %v136_v51, %v143_v49 }
 0x128   :  { %v139_v55 = vsub.f32 %v137_v52, %v138_v53  ;;  %v146_v56 = vmul.f32 %v144_v54, %v106_v27 }
 0x12a   :  { %v151_v57 = vrot.slane %v139_v55, %v143_v49 }
 0x12c   :  { %v153_v58 = vadd.f32 %v151_v57, %v146_v56 }
 0x12e   :  { %v154_v59 = vmax.f32 %v153_v58, 0.0 }
 0x130   :  { %155 = vst [vmem:[%s333_s4] sm:$0xff] %v154_v59 }

// kernel: mlp_forward.5
= control target key start
LH: loop header
LB: loop body
LE: loop exit
PB: predicated region body
PF: predicated region fallthrough
CT: control target
= control target key end

     0   :  { %v242_v3 = vmov 0.0|0.0   ;;  %vm243_vm0 = vmmov 0   ;;  %v244_v6 = vmov 0.0   ;;  %s332_s0 = inlined_call_operand.vmem [shape: f32[8,128], index: 0, kind: input, shape index: {}]   ;;  %s333_s1 = inlined_call_operand.vmem [shape: f32[128,128], index: 1, kind: input, shape index: {}]   ;;  %s334_s2 = inlined_call_operand.vmem [shape: f32[1,128], index: 2, kind: input, shape index: {}]   ;;  %s335_s3 = inlined_call_operand.hbm [shape: f32[8,128], index: 3, kind: output, shape index: {}]  }
   0x1   :  { %v22_v0 = vld [vmem:[%s333_s1] sm:$0xff]  ;;  %v23_v1 = vld [vmem:[%s333_s1 + $0x8] sm:$0xff]  ;;  %v24_v2 = vld [vmem:[%s333_s1 + $0x10] sm:$0xff]  ;;  %190 = vmatprep.subr.bf16.mxu0 %v242_v3  ;;  %187 = vmatprep.mubr.msk.f32.mxu0 %vm243_vm0, %v244_v6 }
   0x2   :  { %v191_v4 = vpack.c.bf16 %v23_v1, %v22_v0  ;;  %v25_v5 = vld [vmem:[%s333_s1 + $0x18] sm:$0xff]  ;;  %v26_v8 = vld [vmem:[%s333_s1 + $0x20] sm:$0xff]  ;;  %v27_v9 = vld [vmem:[%s333_s1 + $0x28] sm:$0xff] }
   0x3   :  { %v194_v7 = vpack.c.bf16 %v25_v5, %v24_v2 }
   0x4   :  { %192 = vmatpush3.bf16.msra.mxu0 %v191_v4 }
   0x5   :  { %193 = vmatprep.subr.bf16.mxu0 %v242_v3 }
   0x6   :  { %8 = vsyncpa [#allocation3], 0  ;;  %v197_v10 = vpack.c.bf16 %v27_v9, %v26_v8  ;;  %v28_v11 = vld [vmem:[%s333_s1 + $0x30] sm:$0xff]  ;;  %v29_v12 = vld [vmem:[%s333_s1 + $0x38] sm:$0xff]  ;;  %s245_s21 = smov [#allocation2]  }
   0x7   :  { %v200_v13 = vpack.c.bf16 %v29_v12, %v28_v11  ;;  %v30_v14 = vld [vmem:[%s333_s1 + $0x40] sm:$0xff]  ;;  %v31_v15 = vld [vmem:[%s333_s1 + $0x48] sm:$0xff]  ;;  %v32_v17 = vld [vmem:[%s333_s1 + $0x50] sm:$0xff]  ;;  %s129_s22 = sshll.u32 %s245_s21, 4  ;;  %s130_s22 = int_to_ptr.vmem [resolvable:$true] %s129_s22 }
   0x8   :  { %195 = vmatpush3.bf16.msra.mxu0 %v194_v7  ;;  %v203_v16 = vpack.c.bf16 %v31_v15, %v30_v14  ;;  %v33_v18 = vld [vmem:[%s333_s1 + $0x58] sm:$0xff]  ;;  %v34_v20 = vld [vmem:[%s333_s1 + $0x60] sm:$0xff]  ;;  %v35_v21 = vld [vmem:[%s333_s1 + $0x68] sm:$0xff]  ;;  %p223_p1 = scmp.lt.s32.totalorder %s130_s22, %s130_s22 }
   0x9   :  { %196 = vmatprep.subr.bf16.mxu0 %v242_v3  ;;  %v206_v19 = vpack.c.bf16 %v33_v18, %v32_v17  ;;  %v209_v22 = vpack.c.bf16 %v35_v21, %v34_v20  ;;  %v36_v23 = vld [vmem:[%s333_s1 + $0x70] sm:$0xff]  ;;  %v37_v24 = vld [vmem:[%s333_s1 + $0x78] sm:$0xff]  ;;  %v21_v26 = vld [vmem:[%s332_s0] sm:$0xff]  ;;  %s218_s1 = scalar_lea.vmem %s130_s22, 128 }
   0xa   :  { %v212_v25 = vpack.c.bf16 %v37_v24, %v36_v23  ;;  %v137_v28 = vld [vmem:[%s334_s2] ss:$0 sm:$0xff]  ;;  %p219_p0 = scmp.ne.s32.totalorder %s130_s22, %s218_s1  ;;  %p224_p2 = scmp.lt.s32.totalorder %s218_s1, %s218_s1 }
   0xc   :  { %198 = vmatpush3.bf16.msra.mxu0 %v197_v10  ;;  %p225_p3 = por %p224_p2, %p223_p1 }
   0xd   :  { %199 = vmatprep.subr.bf16.mxu0 %v242_v3 }
   0xe   :  { %p226_p4 = pnand %p225_p3, %p219_p0 }
  0x10   :  { %201 = vmatpush3.bf16.msra.mxu0 %v200_v13 }
  0x11   :  { %202 = vmatprep.subr.bf16.mxu0 %v242_v3 }
  0x14   :  { %204 = vmatpush3.bf16.msra.mxu0 %v203_v16 }
  0x15   :  { %205 = vmatprep.subr.bf16.mxu0 %v242_v3 }
  0x18   :  { %207 = vmatpush3.bf16.msra.mxu0 %v206_v19 }
  0x19   :  { %208 = vmatprep.subr.bf16.mxu0 %v242_v3 }
  0x1c   :  { %210 = vmatpush3.bf16.msra.mxu0 %v209_v22 }
  0x1d   :  { %211 = vmatprep.subr.bf16.mxu0 %v242_v3 }
  0x20   :  { %213 = vmatpush3.bf16.msra.mxu0 %v212_v25 }
  0x23   :  { %188 = vmatmul.mubr.f32.vlgmr.msra.gmra.mrb[0].mxu0 %v21_v26 }
  0xf6   :  { %v104_v27 = vpop.f32.mrb[0].mxu0 }
  0xf7   :  { %v189_v29 = vpop.f32.mrb[1].mxu0  ;;  %v121_v30 = vadd.f32 %v137_v28, %v104_v27 }
  0xf9   :  { %122 = vst [vmem:[#allocation2] sm:$0xff] %v121_v30 }
  0xfa   :  { %229 = shalt.err (!%p226_p4)
}
  0xfb   :  { %s230_s24 = scalar_lea.hbm %s335_s3, 128 }
  0xfc   :  { %p231_p5 = scmp.ne.s32.totalorder %s335_s3, %s230_s24  ;;  %p234_p6 = scmp.lt.u32.totalorder %s230_s24, %s335_s3 }
  0xfe   :  { %p236_p7 = pnand %p234_p6, %p231_p5 }
 0x100   :  { %239 = shalt.err (!%p236_p7)
}
 0x101   :  { %132 = dma.vmem_to_hbm [thread:$0]  %s130_s22, 128, %s335_s3, [#allocation3]  }
 0x102   :  { %240 = dma.done.wait [#allocation3], 128  }
 0x103   :  { %241 = vsyncadd [#allocation3], 4294967168 }
 0x104   :  { %136 = vsyncpa [#allocation3], 1 }

</bundles_post_ra>
